<compile_context>
chip_gen: v7x
topology: tpu7x:2x2x1
jax: 0.10.0
libtpu: 0.0.40
codegen_flags: <defaults>
</compile_context>

<pallas_src>
import math
import jax
import jax.numpy as jnp
from jax.experimental import pallas as pl
from jax.experimental.pallas import tpu as pltpu


def _round_up(x, m):
    return ((x + m - 1) // m) * m


def actor_critic_kernel(x_ref, w1_ref, b1_ref,
                        wac1_ref, bac1_ref, wac2_ref, bac2_ref,
                        out_ref):
    x = x_ref[...]

    # shared trunk: Linear + ReLU  (Dropout == identity in eval mode)
    h = jnp.dot(x, w1_ref[...], preferred_element_type=jnp.float32) + b1_ref[...]
    h = jnp.maximum(h, 0.0).astype(wac1_ref.dtype)

    # fused actor+critic hidden layer: one (H1 -> 2*H2) matmul + bias + ReLU
    hac = jnp.dot(h, wac1_ref[...], preferred_element_type=jnp.float32) + bac1_ref[...]
    hac = jnp.maximum(hac, 0.0).astype(wac2_ref.dtype)

    # fused output layer: block-diagonal (2*H2 -> out_dim) matmul + bias
    out = jnp.dot(hac, wac2_ref[...], preferred_element_type=jnp.float32) + bac2_ref[...]
    out_ref[...] = out.astype(out_ref.dtype)


def _vmem_limit_bytes(TB, state_dim, H1, twoH2, out_dim, itemsize):
    """Conservative VMEM budget estimate (double-buffered blocks + headroom)."""
    lane = 128
    est = TB * _round_up(state_dim, lane) * itemsize * 2          # x blocks (2 bufs)
    est += TB * _round_up(out_dim, lane) * 4 * 2                  # out blocks (f32, 2 bufs)
    est += TB * (_round_up(H1, lane) + _round_up(twoH2, lane)) * 4  # intermediates
    est += 4 << 20                                                # weights + misc headroom
    return int(min(max(2 * est, 32 << 20), 64 << 20))


def actor_critic_forward(state, fused, *, batch_block=2048):
    """Fused forward pass.

    state: (B, state_dim) float32.
    fused: dict from prepare_params (pre-fused weights).
    Returns (actor_logits (B, action_dim), critic_value (B, 1)).
    """
    B, state_dim = state.shape
    out_dim = fused["wac2"].shape[1]            # action_dim + 1 (or 128 if lane-dense)
    action_dim = int(fused["action_dim"])
    H1 = fused["w1"].shape[1]
    twoH2 = fused["wac1"].shape[1]

    w_dtype = fused["w1"].dtype
    x = state if state.dtype == w_dtype else state.astype(w_dtype)

    # ---- batch tile selection (no padding; ragged boundary block is masked) ----
    batch_block = max(8, _round_up(int(batch_block), 8))
    if B <= 8:
        TB = B                                   # single full-array block
    else:
        # >= 2 grid steps so v7x's two TensorCores both get work on moderate B,
        # capped at batch_block for large B (big tiles amortize grid-step overhead).
        TB = min(batch_block, _round_up((B + 1) // 2, 8))
    grid = ((B + TB - 1) // TB,)

    weight_args = (fused["w1"], fused["b1"],
                   fused["wac1"], fused["bac1"],
                   fused["wac2"], fused["bac2"])

    # Weights/biases stay resident across the (parallel) batch grid.
    def weight_spec(a):
        return pl.BlockSpec(a.shape, lambda i: (0, 0))

    vmem_limit = _vmem_limit_bytes(TB, state_dim, H1, twoH2, out_dim, x.dtype.itemsize)

    out = pl.pallas_call(
        actor_critic_kernel,
        out_shape=jax.ShapeDtypeStruct((B, out_dim), jnp.float32),
        grid=grid,
        in_specs=[pl.BlockSpec((TB, state_dim), lambda i: (i, 0))]
                 + [weight_spec(a) for a in weight_args],
        out_specs=pl.BlockSpec((TB, out_dim), lambda i: (i, 0)),
        compiler_params=pltpu.CompilerParams(
            dimension_semantics=("parallel",),
            vmem_limit_bytes=vmem_limit),
    )(x, *weight_args)

    return out[:, :action_dim], out[:, action_dim:action_dim + 1]


def init_params(key, state_dim, action_dim, hidden_dims):
    """Deterministic PyTorch-style (uniform +/- 1/sqrt(fan_in)) init.
    Weights stored transposed: (in_dim, out_dim). Biases stored as (1, out_dim)."""
    H1, H2 = hidden_dims

    def linear(key, fan_in, fan_out):
        kw, kb = jax.random.split(key)
        bound = 1.0 / math.sqrt(fan_in)
        w = jax.random.uniform(kw, (fan_in, fan_out), jnp.float32, -bound, bound)
        b = jax.random.uniform(kb, (1, fan_out), jnp.float32, -bound, bound)
        return w, b

    keys = jax.random.split(key, 5)
    w1, b1 = linear(keys[0], state_dim, H1)        # shared Linear
    wa1, ba1 = linear(keys[1], H1, H2)             # actor hidden Linear
    wa2, ba2 = linear(keys[2], H2, action_dim)     # actor output Linear (discrete)
    wc1, bc1 = linear(keys[3], H1, H2)             # critic hidden Linear
    wc2, bc2 = linear(keys[4], H2, 1)              # critic output Linear
    return dict(w1=w1, b1=b1, wa1=wa1, ba1=ba1, wa2=wa2, ba2=ba2,
                wc1=wc1, bc1=bc1, wc2=wc2, bc2=bc2)


def prepare_params(p, *, lane_dense_out=False, compute_dtype=jnp.float32):
    """One-time fusion of actor/critic head weights (done OUTSIDE the hot path).

    wac1 = [wa1 | wc1]                    : (H1, 2*H2)
    bac1 = [ba1 | bc1]                    : (1, 2*H2)
    wac2 = blockdiag(wa2, wc2)            : (2*H2, out_cols)
    bac2 = [ba2 | bc2 | 0...]             : (1, out_cols)

    lane_dense_out: pad the fused output to 128 columns (full-lane stores; A/B
                    option — trades wider HBM writeback for unmasked vst).
    compute_dtype : dtype of weight matrices / matmul inputs (biases + accumulation
                    stay f32).  bf16 recommended on v6e/v7x.
    """
    H2 = p["wa1"].shape[1]
    action_dim = p["wa2"].shape[1]
    out_dim = action_dim + 1
    out_cols = _round_up(out_dim, 128) if lane_dense_out else out_dim

    wac1 = jnp.concatenate([p["wa1"], p["wc1"]], axis=1)
    bac1 = jnp.concatenate([p["ba1"], p["bc1"]], axis=1)

    wac2 = jnp.zeros((2 * H2, out_cols), dtype=jnp.float32)
    wac2 = wac2.at[:H2, :action_dim].set(p["wa2"])
    wac2 = wac2.at[H2:, action_dim:out_dim].set(p["wc2"])
    bac2 = jnp.zeros((1, out_cols), dtype=jnp.float32)
    bac2 = bac2.at[:, :action_dim].set(p["ba2"])
    bac2 = bac2.at[:, action_dim:out_dim].set(p["bc2"])

    cd = compute_dtype
    return dict(
        w1=p["w1"].astype(cd), b1=p["b1"],
        wac1=wac1.astype(cd), bac1=bac1,
        wac2=wac2.astype(cd), bac2=bac2,
        action_dim=action_dim,
    )


def reference_forward(state, p):
    """Plain-JAX reference mirroring the PyTorch forward (eval mode), unfused weights."""
    h = jnp.maximum(state @ p["w1"] + p["b1"], 0.0)
    a1 = jnp.maximum(h @ p["wa1"] + p["ba1"], 0.0)
    actor = a1 @ p["wa2"] + p["ba2"]
    c1 = jnp.maximum(h @ p["wc1"] + p["bc1"], 0.0)
    critic = c1 @ p["wc2"] + p["bc2"]
    return actor, critic


if __name__ == "__main__":
    # Small shapes consistent with the module's forward: state (B, state_dim).
    B, state_dim, action_dim = 8, 32, 8
    hidden_dims = [64, 64]

    key = jax.random.PRNGKey(0)
    k_state, k_params, k_big = jax.random.split(key, 3)

    state = jax.random.normal(k_state, (B, state_dim), dtype=jnp.float32)
    params = init_params(k_params, state_dim, action_dim, hidden_dims)
    fused = prepare_params(params)   # one-time weight fusion (not per call)

    # --- small-batch path (single full-array block, 1 grid step) -------------
    actor_out, critic_out = jax.block_until_ready(actor_critic_forward(state, fused))
    actor_ref, critic_ref = reference_forward(state, params)
    assert actor_out.shape == (B, action_dim)
    assert critic_out.shape == (B, 1)
    assert jnp.allclose(actor_out, actor_ref, atol=1e-5, rtol=1e-5)
    assert jnp.allclose(critic_out, critic_ref, atol=1e-5, rtol=1e-5)

    # --- moderate ragged batch: no pad, >=2 grid steps (v7x two-TC sharding) --
    Bg = 1030
    state_big = jax.random.normal(k_big, (Bg, state_dim), dtype=jnp.float32)
    actor_b, critic_b = jax.block_until_ready(actor_critic_forward(state_big, fused))
    actor_rb, critic_rb = reference_forward(state_big, params)
    assert actor_b.shape == (Bg, action_dim)
    assert critic_b.shape == (Bg, 1)
    assert jnp.allclose(actor_b, actor_rb, atol=1e-4, rtol=1e-4)
    assert jnp.allclose(critic_b, critic_rb, atol=1e-4, rtol=1e-4)

    # --- lane-dense output variant (full-lane stores A/B option) --------------
    fused_ld = prepare_params(params, lane_dense_out=True)
    actor_l, critic_l = jax.block_until_ready(actor_critic_forward(state_big, fused_ld))
    assert actor_l.shape == (Bg, action_dim) and critic_l.shape == (Bg, 1)
    assert jnp.allclose(actor_l, actor_rb, atol=1e-4, rtol=1e-4)
    assert jnp.allclose(critic_l, critic_rb, atol=1e-4, rtol=1e-4)

    # --- bf16 weight/activation option (native MXU dtype on v6e/v7x) ----------
    fused_bf = prepare_params(params, compute_dtype=jnp.bfloat16)
    actor_h, critic_h = jax.block_until_ready(actor_critic_forward(state, fused_bf))
    assert actor_h.shape == (B, action_dim) and critic_h.shape == (B, 1)
    assert jnp.allclose(actor_h, actor_ref, atol=5e-2, rtol=5e-2)
    assert jnp.allclose(critic_h, critic_ref, atol=5e-2, rtol=5e-2)

    print("KERNEL_OK")
</pallas_src>

<mosaic_0001>
module attributes {stable_mosaic.version = 11 : i64} {
  func.func @actor_critic_kernel(%arg0: i32, %arg1: memref<8x32xf32, #tpu.memory_space<vmem>>, %arg2: memref<32x64xf32, #tpu.memory_space<vmem>>, %arg3: memref<1x64xf32, #tpu.memory_space<vmem>>, %arg4: memref<64x128xf32, #tpu.memory_space<vmem>>, %arg5: memref<1x128xf32, #tpu.memory_space<vmem>>, %arg6: memref<128x9xf32, #tpu.memory_space<vmem>>, %arg7: memref<1x9xf32, #tpu.memory_space<vmem>>, %arg8: memref<8x9xf32, #tpu.memory_space<vmem>>) attributes {dimension_semantics = [#tpu.dimension_semantics<parallel>], iteration_bounds = array<i64: 1>, scalar_prefetch = 0 : i64, scratch_operands = 0 : i64, tpu.core_type = #tpu.core_type<tc>, window_params = [{transform_indices = @transform_0, window_bounds = array<i64: 8, 32>}, {pipeline_mode = #tpu.pipeline_mode<synchronous>, transform_indices = @transform_1, window_bounds = array<i64: 32, 64>}, {pipeline_mode = #tpu.pipeline_mode<synchronous>, transform_indices = @transform_2, window_bounds = array<i64: 1, 64>}, {pipeline_mode = #tpu.pipeline_mode<synchronous>, transform_indices = @transform_3, window_bounds = array<i64: 64, 128>}, {pipeline_mode = #tpu.pipeline_mode<synchronous>, transform_indices = @transform_4, window_bounds = array<i64: 1, 128>}, {pipeline_mode = #tpu.pipeline_mode<synchronous>, transform_indices = @transform_5, window_bounds = array<i64: 128, 9>}, {pipeline_mode = #tpu.pipeline_mode<synchronous>, transform_indices = @transform_6, window_bounds = array<i64: 1, 9>}, {transform_indices = @transform_7, window_bounds = array<i64: 8, 9>}]} {
    %c0 = arith.constant 0 : index
    %c0_0 = arith.constant 0 : index
    %0 = vector.load %arg1[%c0, %c0_0] : memref<8x32xf32, #tpu.memory_space<vmem>>, vector<8x32xf32>
    %c0_1 = arith.constant 0 : index
    %c0_2 = arith.constant 0 : index
    %1 = vector.load %arg2[%c0_1, %c0_2] : memref<32x64xf32, #tpu.memory_space<vmem>>, vector<32x64xf32>
    %cst = arith.constant dense<0.000000e+00> : vector<8x64xf32>
    %2 = tpu.matmul %0, %1, %cst {dimension_numbers = #tpu.dot_dimension_numbers<[1], [0], [0], [1], [0, 0, 1, 1], [], []>} : vector<8x32xf32>, vector<32x64xf32>, vector<8x64xf32> -> vector<8x64xf32>
    %c0_3 = arith.constant 0 : index
    %c0_4 = arith.constant 0 : index
    %3 = vector.load %arg3[%c0_3, %c0_4] : memref<1x64xf32, #tpu.memory_space<vmem>>, vector<1x64xf32>
    %4 = vector.broadcast %3 : vector<1x64xf32> to vector<8x64xf32>
    %5 = arith.addf %2, %4 : vector<8x64xf32>
    %cst_5 = arith.constant 0.000000e+00 : f32
    %6 = vector.broadcast %cst_5 : f32 to vector<8x64xf32>
    %7 = arith.maximumf %5, %6 : vector<8x64xf32>
    %c0_6 = arith.constant 0 : index
    %c0_7 = arith.constant 0 : index
    %8 = vector.load %arg4[%c0_6, %c0_7] : memref<64x128xf32, #tpu.memory_space<vmem>>, vector<64x128xf32>
    %cst_8 = arith.constant dense<0.000000e+00> : vector<8x128xf32>
    %9 = tpu.matmul %7, %8, %cst_8 {dimension_numbers = #tpu.dot_dimension_numbers<[1], [0], [0], [1], [0, 0, 1, 1], [], []>} : vector<8x64xf32>, vector<64x128xf32>, vector<8x128xf32> -> vector<8x128xf32>
    %c0_9 = arith.constant 0 : index
    %c0_10 = arith.constant 0 : index
    %10 = vector.load %arg5[%c0_9, %c0_10] : memref<1x128xf32, #tpu.memory_space<vmem>>, vector<1x128xf32>
    %11 = vector.broadcast %10 : vector<1x128xf32> to vector<8x128xf32>
    %12 = arith.addf %9, %11 : vector<8x128xf32>
    %cst_11 = arith.constant 0.000000e+00 : f32
    %13 = vector.broadcast %cst_11 : f32 to vector<8x128xf32>
    %14 = arith.maximumf %12, %13 : vector<8x128xf32>
    %c0_12 = arith.constant 0 : index
    %c0_13 = arith.constant 0 : index
    %15 = vector.load %arg6[%c0_12, %c0_13] : memref<128x9xf32, #tpu.memory_space<vmem>>, vector<128x9xf32>
    %cst_14 = arith.constant dense<0.000000e+00> : vector<8x9xf32>
    %16 = tpu.matmul %14, %15, %cst_14 {dimension_numbers = #tpu.dot_dimension_numbers<[1], [0], [0], [1], [0, 0, 1, 1], [], []>} : vector<8x128xf32>, vector<128x9xf32>, vector<8x9xf32> -> vector<8x9xf32>
    %c0_15 = arith.constant 0 : index
    %c0_16 = arith.constant 0 : index
    %17 = vector.load %arg7[%c0_15, %c0_16] : memref<1x9xf32, #tpu.memory_space<vmem>>, vector<1x9xf32>
    %18 = vector.broadcast %17 : vector<1x9xf32> to vector<8x9xf32>
    %19 = arith.addf %16, %18 : vector<8x9xf32>
    %c0_17 = arith.constant 0 : index
    %c0_18 = arith.constant 0 : index
    %20 = vector.load %arg8[%c0_17, %c0_18] : memref<8x9xf32, #tpu.memory_space<vmem>>, vector<8x9xf32>
    tpu.vector_store %arg8[%c0_17, %c0_18], %19 {strides = array<i32>} : memref<8x9xf32, #tpu.memory_space<vmem>>, vector<8x9xf32>,
    return
  }
  func.func @transform_0(%arg0: i32) -> (i32, i32) {
    %c0_i32 = arith.constant 0 : i32
    %c0_i32_0 = arith.constant 0 : i32
    return %arg0, %c0_i32 : i32, i32
  }
  func.func @transform_1(%arg0: i32) -> (i32, i32) {
    %c0_i32 = arith.constant 0 : i32
    %c0_i32_0 = arith.constant 0 : i32
    %c0_i32_1 = arith.constant 0 : i32
    return %c0_i32, %c0_i32_0 : i32, i32
  }
  func.func @transform_2(%arg0: i32) -> (i32, i32) {
    %c0_i32 = arith.constant 0 : i32
    %c0_i32_0 = arith.constant 0 : i32
    %c0_i32_1 = arith.constant 0 : i32
    return %c0_i32, %c0_i32_0 : i32, i32
  }
  func.func @transform_3(%arg0: i32) -> (i32, i32) {
    %c0_i32 = arith.constant 0 : i32
    %c0_i32_0 = arith.constant 0 : i32
    %c0_i32_1 = arith.constant 0 : i32
    return %c0_i32, %c0_i32_0 : i32, i32
  }
  func.func @transform_4(%arg0: i32) -> (i32, i32) {
    %c0_i32 = arith.constant 0 : i32
    %c0_i32_0 = arith.constant 0 : i32
    %c0_i32_1 = arith.constant 0 : i32
    return %c0_i32, %c0_i32_0 : i32, i32
  }
  func.func @transform_5(%arg0: i32) -> (i32, i32) {
    %c0_i32 = arith.constant 0 : i32
    %c0_i32_0 = arith.constant 0 : i32
    %c0_i32_1 = arith.constant 0 : i32
    return %c0_i32, %c0_i32_0 : i32, i32
  }
  func.func @transform_6(%arg0: i32) -> (i32, i32) {
    %c0_i32 = arith.constant 0 : i32
    %c0_i32_0 = arith.constant 0 : i32
    %c0_i32_1 = arith.constant 0 : i32
    return %c0_i32, %c0_i32_0 : i32, i32
  }
  func.func @transform_7(%arg0: i32) -> (i32, i32) {
    %c0_i32 = arith.constant 0 : i32
    %c0_i32_0 = arith.constant 0 : i32
    return %arg0, %c0_i32 : i32, i32
  }
}

</mosaic_0001>

<bundles_post_ra>
// kernel: tpu_custom_call.1
= control target key start
LH: loop header
LB: loop body
LE: loop exit
PB: predicated region body
PF: predicated region fallthrough
CT: control target
= control target key end

     0   :  { %v484_v3 = vmov 0.0|0.0   ;;  %vm485_vm0 = vmmov 0   ;;  %v486_v6 = vmov 0.0   ;;  %s653_s0 = inlined_call_operand.vmem [shape: f32[8,32], index: 0, kind: input, shape index: {}]   ;;  %s654_s1 = inlined_call_operand.vmem [shape: f32[32,64], index: 1, kind: input, shape index: {}]   ;;  %s655_s2 = inlined_call_operand.vmem [shape: f32[1,64], index: 2, kind: input, shape index: {}]   ;;  %s656_s3 = inlined_call_operand.vmem [shape: f32[64,128], index: 3, kind: input, shape index: {}]   ;;  %s657_s4 = inlined_call_operand.vmem [shape: f32[1,128], index: 4, kind: input, shape index: {}]   ;;  %s658_s5 = inlined_call_operand.vmem [shape: f32[128,9], index: 5, kind: input, shape index: {}]   ;;  %s659_s6 = inlined_call_operand.vmem [shape: f32[1,9], index: 6, kind: input, shape index: {}]   ;;  %s660_s7 = inlined_call_operand.hbm [shape: f32[8,9], index: 7, kind: output, shape index: {}]  }
   0x1   :  { %v28_v0 = vld [vmem:[%s654_s1] sm:$0xff]  ;;  %v29_v1 = vld [vmem:[%s654_s1 + $0x8] sm:$0xff]  ;;  %v30_v2 = vld [vmem:[%s654_s1 + $0x10] sm:$0xff]  ;;  %414 = vmatprep.subr.bf16.mxu1 %v484_v3  ;;  %357 = vmatprep.mubr.msk.f32.mxu1 %vm485_vm0, %v486_v6 }
   0x2   :  { %v415_v4 = vpack.c.bf16 %v29_v1, %v28_v0  ;;  %v31_v5 = vld [vmem:[%s654_s1 + $0x18] sm:$0xff]  ;;  %432 = vmatprep.subr.bf16.mxu0 %v484_v3  ;;  %411 = vmatprep.mubr.msk.f32.mxu0 %vm485_vm0, %v486_v6  ;;  %v114_v8 = vld [vmem:[%s656_s3] sm:$0xff]  ;;  %v115_v9 = vld [vmem:[%s656_s3 + $0x8] sm:$0xff] }
   0x3   :  { %v418_v7 = vpack.c.bf16 %v31_v5, %v30_v2 }
   0x4   :  { %416 = vmatpush3.bf16.msra.mxu1 %v415_v4 }
   0x5   :  { %417 = vmatprep.subr.bf16.mxu1 %v484_v3 }
   0x6   :  { %12 = vsyncpa [#allocation3], 0  ;;  %v27_v10 = vld [vmem:[%s653_s0] sm:$0xff]  ;;  %vm39_vm1 = vcmask 261120   ;;  %v421_v11 = vpack.c.bf16 %v115_v9, %v114_v8  ;;  %v116_v12 = vld [vmem:[%s656_s3 + $0x10] sm:$0xff]  ;;  %vm129_vm2 = vcmask 523264  }
   0x7   :  { %v117_v13 = vld [vmem:[%s656_s3 + $0x18] sm:$0xff]  ;;  %v118_v15 = vld [vmem:[%s656_s3 + $0x20] sm:$0xff]  ;;  %v119_v16 = vld [vmem:[%s656_s3 + $0x28] sm:$0xff]  ;;  %s487_s12 = smov [#allocation2]   ;;  %vm297_vm3 = vcmask 72704  }
   0x8   :  { %419 = vmatpush3.bf16.msra.mxu1 %v418_v7  ;;  %v424_v14 = vpack.c.bf16 %v117_v13, %v116_v12  ;;  %v427_v17 = vpack.c.bf16 %v119_v16, %v118_v15  ;;  %v120_v18 = vld [vmem:[%s656_s3 + $0x30] sm:$0xff]  ;;  %v121_v19 = vld [vmem:[%s656_s3 + $0x38] sm:$0xff]  ;;  %v204_v21 = vld [vmem:[%s658_s5] sm:$0xff]  ;;  %s305_s1 = sshll.u32 %s487_s12, 4  ;;  %s306_s1 = int_to_ptr.vmem [resolvable:$true] %s305_s1 }
   0x9   :  { %420 = vmatprep.subr.bf16.mxu1 %v484_v3  ;;  %v430_v20 = vpack.c.bf16 %v121_v19, %v120_v18  ;;  %v205_v22 = vld [vmem:[%s658_s5 + $0x8] sm:$0xff]  ;;  %v206_v23 = vld [vmem:[%s658_s5 + $0x10] sm:$0xff]  ;;  %v207_v25 = vld [vmem:[%s658_s5 + $0x18] sm:$0xff]  ;;  %p465_p1 = scmp.lt.s32.totalorder %s306_s1, %s306_s1 }
   0xa   :  { %v433_v24 = vpack.c.bf16 %v205_v22, %v204_v21  ;;  %v436_v26 = vpack.c.bf16 %v207_v25, %v206_v23  ;;  %v208_v27 = vld [vmem:[%s658_s5 + $0x20] sm:$0xff]  ;;  %v209_v28 = vld [vmem:[%s658_s5 + $0x28] sm:$0xff]  ;;  %v210_v30 = vld [vmem:[%s658_s5 + $0x30] sm:$0xff] }
   0xb   :  { %358 = vmatmul.mubr.msk.f32.vlgmr.msra.gmra.mrb[0].mxu1 %vm39_vm1, %v27_v10  ;;  %v439_v29 = vpack.c.bf16 %v209_v28, %v208_v27  ;;  %v211_v31 = vld [vmem:[%s658_s5 + $0x38] sm:$0xff]  ;;  %v212_v33 = vld [vmem:[%s658_s5 + $0x40] sm:$0xff]  ;;  %v213_v34 = vld [vmem:[%s658_s5 + $0x48] sm:$0xff] }
   0xc   :  { %422 = vmatpush3.bf16.msra.mxu1 %v421_v11  ;;  %376 = vmatprep.mubr.msk.f32.mxu1 %vm485_vm0, %v486_v6  ;;  %v442_v32 = vpack.c.bf16 %v211_v31, %v210_v30  ;;  %v445_v35 = vpack.c.bf16 %v213_v34, %v212_v33  ;;  %v214_v36 = vld [vmem:[%s658_s5 + $0x50] sm:$0xff]  ;;  %v215_v37 = vld [vmem:[%s658_s5 + $0x58] sm:$0xff]  ;;  %v216_v39 = vld [vmem:[%s658_s5 + $0x60] sm:$0xff] }
   0xd   :  { %423 = vmatprep.subr.bf16.mxu1 %v484_v3  ;;  %434 = vmatpush3.bf16.msra.mxu0 %v433_v24  ;;  %v448_v38 = vpack.c.bf16 %v215_v37, %v214_v36  ;;  %v217_v40 = vld [vmem:[%s658_s5 + $0x68] sm:$0xff]  ;;  %v313_v42 = vld [vmem:[%s655_s2] ss:$0 sm:$0xff]  ;;  %v218_v47 = vld [vmem:[%s658_s5 + $0x70] sm:$0xff] }
   0xe   :  { %435 = vmatprep.subr.bf16.mxu0 %v484_v3  ;;  %v451_v41 = vpack.c.bf16 %v217_v40, %v216_v39  ;;  %v219_v48 = vld [vmem:[%s658_s5 + $0x78] sm:$0xff]  ;;  %v315_v50 = vld [vmem:[%s657_s4] ss:$0 sm:$0xff]  ;;  %s460_s5 = scalar_lea.vmem %s306_s1, 128 }
   0xf   :  { %v454_v49 = vpack.c.bf16 %v219_v48, %v218_v47  ;;  %v317_v55 = vld [vmem:[%s659_s6] ss:$0 sm:$0xff]  ;;  %p461_p0 = scmp.ne.s32.totalorder %s306_s1, %s460_s5  ;;  %p466_p2 = scmp.lt.s32.totalorder %s460_s5, %s460_s5 }
  0x10   :  { %425 = vmatpush3.bf16.msra.mxu1 %v424_v14 }
  0x11   :  { %426 = vmatprep.subr.bf16.mxu1 %v484_v3  ;;  %437 = vmatpush3.bf16.msra.mxu0 %v436_v26  ;;  %p467_p3 = por %p466_p2, %p465_p1 }
  0x12   :  { %438 = vmatprep.subr.bf16.mxu0 %v484_v3 }
  0x13   :  { %p468_p4 = pnand %p467_p3, %p461_p0 }
  0x14   :  { %428 = vmatpush3.bf16.msra.mxu1 %v427_v17 }
  0x15   :  { %429 = vmatprep.subr.bf16.mxu1 %v484_v3  ;;  %440 = vmatpush3.bf16.msra.mxu0 %v439_v29 }
  0x16   :  { %441 = vmatprep.subr.bf16.mxu0 %v484_v3 }
  0x18   :  { %431 = vmatpush3.bf16.msra.mxu1 %v430_v20 }
  0x19   :  { %443 = vmatpush3.bf16.msra.mxu0 %v442_v32 }
  0x1a   :  { %444 = vmatprep.subr.bf16.mxu0 %v484_v3 }
  0x1d   :  { %446 = vmatpush3.bf16.msra.mxu0 %v445_v35 }
  0x1e   :  { %447 = vmatprep.subr.bf16.mxu0 %v484_v3 }
  0x21   :  { %449 = vmatpush3.bf16.msra.mxu0 %v448_v38 }
  0x22   :  { %450 = vmatprep.subr.bf16.mxu0 %v484_v3 }
  0x25   :  { %452 = vmatpush3.bf16.msra.mxu0 %v451_v41 }
  0x26   :  { %453 = vmatprep.subr.bf16.mxu0 %v484_v3 }
  0x29   :  { %455 = vmatpush3.bf16.msra.mxu0 %v454_v49 }
  0xde   :  { %v109_v43 = vpop.f32.mrb[0].mxu1 }
  0xdf   :  { %v110_v44 = vadd.f32 %v313_v42, %v109_v43  ;;  %v359_v45 = vpop.f32.mrb[1].mxu1 }
  0xe1   :  { %v113_v46 = vmax.f32 %v110_v44, 0.0 }
  0xe3   :  { %377 = vmatmul.mubr.msk.f32.vlgmr.msra.gmra.mrb[2].mxu1 %vm129_vm2, %v113_v46 }
 0x1b6   :  { %v199_v51 = vpop.f32.mrb[2].mxu1 }
 0x1b7   :  { %v200_v52 = vadd.f32 %v315_v50, %v199_v51  ;;  %v378_v53 = vpop.f32.mrb[3].mxu1 }
 0x1b9   :  { %v203_v54 = vmax.f32 %v200_v52, 0.0 }
 0x1bb   :  { %412 = vmatmul.mubr.f32.vlgmr.msra.gmra.mrb[0].mxu0 %v203_v54 }
 0x28e   :  { %v293_v56 = vpop.f32.mrb[0].mxu0 }
 0x28f   :  { %v294_v57 = vadd.f32 %v317_v55, %v293_v56  ;;  %v413_v58 = vpop.f32.mrb[1].mxu0 }
 0x291   :  { %298 = vst.msk [vmem:[#allocation2] sm:$0xff] %vm297_vm3, %v294_v57 }
 0x292   :  { %471 = shalt.err (!%p468_p4)
}
 0x293   :  { %s472_s14 = scalar_lea.hbm %s660_s7, 128 }
 0x294   :  { %p473_p5 = scmp.ne.s32.totalorder %s660_s7, %s472_s14  ;;  %p476_p6 = scmp.lt.u32.totalorder %s472_s14, %s660_s7 }
 0x296   :  { %p478_p7 = pnand %p476_p6, %p473_p5 }
 0x298   :  { %481 = shalt.err (!%p478_p7)
}
 0x299   :  { %308 = dma.vmem_to_hbm [thread:$0]  %s306_s1, 128, %s660_s7, [#allocation3]  }
 0x29a   :  { %482 = dma.done.wait [#allocation3], 128  }
 0x29b   :  { %483 = vsyncadd [#allocation3], 4294967168 }
 0x29c   :  { %312 = vsyncpa [#allocation3], 1 }

</bundles_post_ra>
